<compile_context>
chip_gen: v7x
topology: tpu7x:2x2x1
jax: 0.10.0
libtpu: 0.0.40
codegen_flags: <defaults>
</compile_context>

<pallas_src>
import functools

import jax
import jax.numpy as jnp
from jax import lax
from jax.experimental import pallas as pl
from jax.experimental.pallas import tpu as pltpu


def _round_up(x, m):
    return ((x + m - 1) // m) * m


def _ceil_div(a, b):
    return -(-a // b)


# --------------------------------------------------------------------------
# Kernels
# --------------------------------------------------------------------------
def _output_fused_kernel(ids_ref, hist_ref, w_hi_ref, w_lo_ref,
                         out_r_ref, out_i_ref, *, fold, vocab):
    """Fused one-hot MXU gather + complex multiply by e^{i*hist}.

    ids_ref  : VMEM i32[tile, fold]          token ids, pre-shifted by h*vocab
    hist_ref : VMEM  f[tile, L]              histories, L = fold * dim
    w_hi/lo  : VMEM bf16[fold*vocab, 2*L]    hi/lo bf16 split of the pre-rotated
                                             fold-block-diagonal table [wr' | wi']
    outputs  : f32[tile, L] real / imag planes of the complex result
    """
    tile = hist_ref.shape[0]
    L = hist_ref.shape[1]
    K = fold * vocab

    ids = ids_ref[...]                                              # (tile, fold)
    iota = lax.broadcasted_iota(jnp.int32, (tile, K), 1)
    match = ids[:, 0:1] == iota
    for h in range(1, fold):                                        # fold is static (1 or 2)
        match = jnp.logical_or(match, ids[:, h:h + 1] == iota)
    # Exact 0/1 one-hot, fed to the MXU in bf16 (single pass).
    onehot = jnp.where(match, 1.0, 0.0).astype(jnp.bfloat16)        # (tile, K)

    # One fused gather for real+imag and every fold slot; hi+lo split recovers
    # ~f32 table accuracy while both matmuls stay single-pass bf16 on the MXU.
    emb = (jnp.dot(onehot, w_hi_ref[...], preferred_element_type=jnp.float32)
           + jnp.dot(onehot, w_lo_ref[...], preferred_element_type=jnp.float32))
    er = emb[:, :L]
    ei = emb[:, L:]

    hist = hist_ref[...].astype(jnp.float32)
    c = jnp.cos(hist)
    s = jnp.sin(hist)
    # (er + i*ei) * (cos(hist) + i*sin(hist))
    out_r_ref[...] = (er * c - ei * s).astype(out_r_ref.dtype)
    out_i_ref[...] = (er * s + ei * c).astype(out_i_ref.dtype)


def _output_pregathered_kernel(er_ref, ei_ref, hist_ref, out_r_ref, out_i_ref):
    """Fallback hot path: embedding rows (already pre-rotated) gathered by XLA."""
    hist = hist_ref[...].astype(jnp.float32)
    c = jnp.cos(hist)
    s = jnp.sin(hist)
    er = er_ref[...].astype(jnp.float32)
    ei = ei_ref[...].astype(jnp.float32)
    out_r_ref[...] = (er * c - ei * s).astype(out_r_ref.dtype)
    out_i_ref[...] = (er * s + ei * c).astype(out_i_ref.dtype)


# --------------------------------------------------------------------------
# Wrappers
# --------------------------------------------------------------------------
def output_forward_planes(histories, sources, t, word_angles,
                          emb_real, emb_imag, rotary_denom,
                          *, tile_rows=1024, fuse_gather_max_onehot_cols=1024):
    """Returns (real_plane, imag_plane), each (B, S, dim) f32.

    `word_angles` is unused (exactly as in the reference forward).
    Assumes rotary_denom > 0 and scalar t (as in the reference usage).
    """
    del word_angles
    B, S, dim = histories.shape
    N = B * S
    vocab = emb_real.shape[0]

    # Lane folding: pack `fold` tokens into one 128-lane row when dim < 128.
    fold = 128 // dim if (dim < 128 and 128 % dim == 0) else 1
    L = dim * fold

    # ------------------------------------------------------------------
    # Grid-invariant pre-rotation of the table by e^{i * t * time_angle}.
    # e^{i(t*ta + hist)} = e^{i*t*ta} * e^{i*hist}, so this is exact and done
    # once in f32; the kernel only pays cos/sin of `histories`.
    # ------------------------------------------------------------------
    dim_idx = jnp.arange(dim, dtype=jnp.float32)
    time_angle = 1.0 / jnp.asarray(rotary_denom, jnp.float32) ** (dim_idx / dim)
    rot = jnp.asarray(t, jnp.float32) * time_angle                   # (dim,)
    cr, sr = jnp.cos(rot), jnp.sin(rot)
    wr = emb_real.astype(jnp.float32)
    wi = emb_imag.astype(jnp.float32)
    wr_rot = wr * cr - wi * sr                                       # (vocab, dim)
    wi_rot = wr * sr + wi * cr

    hist = histories.reshape(N, dim)          # keep caller dtype; cast in-kernel
    src = sources.reshape(N).astype(jnp.int32)

    # ------------------------------------------------------------------
    # Tiling: minimal number of tiles, rows distributed evenly (tail pad < 8
    # rows per tile); keep >= 2 tiles when there is enough work so both v7x
    # TensorCores are used (neutral on 1-TC v5e/v6e).
    # ------------------------------------------------------------------
    rows_needed = _ceil_div(N, fold)
    min_rows = _round_up(rows_needed, 8)
    tile_rows = _round_up(max(tile_rows, 8), 8)
    n_tiles = _ceil_div(min_rows, tile_rows)
    if min_rows >= 256:
        n_tiles = max(n_tiles, 2)
    tile = _round_up(_ceil_div(min_rows, n_tiles), 8)
    rows_padded = n_tiles * tile
    n_padded = rows_padded * fold
    pad = n_padded - N
    if pad:
        hist = jnp.pad(hist, ((0, pad), (0, 0)))
        src = jnp.pad(src, (0, pad))

    hist_f = hist.reshape(rows_padded, L)                            # contiguous, free
    grid = (n_tiles,)

    row_spec = pl.BlockSpec((tile, L), lambda i: (i, 0))
    out_shape = (jax.ShapeDtypeStruct((rows_padded, L), jnp.float32),
                 jax.ShapeDtypeStruct((rows_padded, L), jnp.float32))
    cparams = pltpu.CompilerParams(
        dimension_semantics=("parallel",),
        vmem_limit_bytes=32 * 1024 * 1024)   # safe on v5e/v6e (128 MiB) and v7x (64 MiB)

    K = fold * vocab
    table_bytes = K * 2 * L * 2 * 2          # hi + lo, bf16
    fuse = (K <= fuse_gather_max_onehot_cols) and (table_bytes <= (8 << 20))

    if fuse:
        # Fold-block-diagonal combined table [wr' | wi']: one (hi+lo) MXU pass
        # yields real+imag for every fold slot, already in its output lanes.
        W = jnp.zeros((K, 2 * L), jnp.float32)
        for h in range(fold):
            W = W.at[h * vocab:(h + 1) * vocab, h * dim:(h + 1) * dim].set(wr_rot)
            W = W.at[h * vocab:(h + 1) * vocab,
                     L + h * dim:L + (h + 1) * dim].set(wi_rot)
        w_hi = W.astype(jnp.bfloat16)
        w_lo = (W - w_hi.astype(jnp.float32)).astype(jnp.bfloat16)

        ids = src.reshape(rows_padded, fold)
        if fold > 1:
            ids = ids + jnp.arange(fold, dtype=jnp.int32) * vocab    # block-diag column

        kern = functools.partial(_output_fused_kernel, fold=fold, vocab=vocab)
        out_r, out_i = pl.pallas_call(
            kern,
            out_shape=out_shape,
            grid=grid,
            in_specs=[
                pl.BlockSpec((tile, fold), lambda i: (i, 0)),        # shifted token ids
                row_spec,                                            # histories (folded)
                pl.BlockSpec((K, 2 * L), lambda i: (0, 0)),          # W hi (resident)
                pl.BlockSpec((K, 2 * L), lambda i: (0, 0)),          # W lo (resident)
            ],
            out_specs=(row_spec, row_spec),
            compiler_params=cparams,
        )(ids, hist_f, w_hi, w_lo)
    else:
        # TODO(synk): for very large vocabularies the gather is done by XLA and
        # materializes (N, dim) temporaries in HBM; a scalar-prefetched in-kernel
        # DMA row gather would remove that extra HBM round trip.
        er = wr_rot[src].reshape(rows_padded, L)
        ei = wi_rot[src].reshape(rows_padded, L)
        out_r, out_i = pl.pallas_call(
            _output_pregathered_kernel,
            out_shape=out_shape,
            grid=grid,
            in_specs=[row_spec, row_spec, row_spec],
            out_specs=(row_spec, row_spec),
            compiler_params=cparams,
        )(er, ei, hist_f)

    out_r = out_r.reshape(n_padded, dim)[:N].reshape(B, S, dim)
    out_i = out_i.reshape(n_padded, dim)[:N].reshape(B, S, dim)
    return out_r, out_i


def output_forward(histories, sources, t, word_angles,
                   emb_real, emb_imag, rotary_denom,
                   *, tile_rows=1024, fuse_gather_max_onehot_cols=1024):
    """Module-parity entry point: returns complex64 (B, S, dim).

    Consumers that can take real/imag planes directly should call
    `output_forward_planes` and skip this extra complex-assembly memory pass.
    """
    out_r, out_i = output_forward_planes(
        histories, sources, t, word_angles, emb_real, emb_imag, rotary_denom,
        tile_rows=tile_rows,
        fuse_gather_max_onehot_cols=fuse_gather_max_onehot_cols)
    return lax.complex(out_r, out_i)


# --------------------------------------------------------------------------
# Reference
# --------------------------------------------------------------------------
def _reference_forward(histories, sources, t, emb_real, emb_imag, rotary_denom):
    dim = histories.shape[-1]
    dim_idx = jnp.arange(dim, dtype=jnp.float32)
    time_angle = 1.0 / rotary_denom ** (dim_idx / dim)
    total_angles = t * time_angle + histories
    rotation = jnp.cos(total_angles) + 1j * jnp.sin(total_angles)
    emb = emb_real[sources] + 1j * emb_imag[sources]
    return (emb * rotation).astype(jnp.complex64)


if __name__ == "__main__":
    # Deterministic synthetic parameters / inputs (small shapes).
    vocab_size = 32
    dim = 64
    B, S = 2, 8
    t = 3.0
    rotary_denom = 0.5

    key = jax.random.PRNGKey(0)
    k_er, k_ei, k_hist, k_src, k_wa = jax.random.split(key, 5)

    emb_real = jax.random.normal(k_er, (vocab_size, dim), dtype=jnp.float32)
    emb_imag = jax.random.normal(k_ei, (vocab_size, dim), dtype=jnp.float32)
    histories = jax.random.normal(k_hist, (B, S, dim), dtype=jnp.float32)
    sources = jax.random.randint(k_src, (B, S), 0, vocab_size, dtype=jnp.int32)
    word_angles = jax.random.normal(k_wa, (B, S, dim), dtype=jnp.float32)  # unused

    ref = _reference_forward(histories, sources, t, emb_real, emb_imag, rotary_denom)

    # Fused one-hot-gather path (default).
    out = output_forward(histories, sources, t, word_angles,
                         emb_real, emb_imag, rotary_denom)
    out = jax.block_until_ready(out)
    assert out.shape == (B, S, dim) and out.dtype == jnp.complex64
    assert jnp.allclose(out, ref, atol=1e-4, rtol=1e-4), "fused path mismatch"

    # Pre-gathered fallback path (forced, exercises the large-vocab branch).
    out_fb = output_forward(histories, sources, t, word_angles,
                            emb_real, emb_imag, rotary_denom,
                            fuse_gather_max_onehot_cols=0)
    out_fb = jax.block_until_ready(out_fb)
    assert jnp.allclose(out_fb, ref, atol=1e-4, rtol=1e-4), "fallback path mismatch"

    print("KERNEL_OK")
</pallas_src>

<mosaic_0001>
module attributes {stable_mosaic.version = 11 : i64} {
  func.func @_output_fused_kernel(%arg0: i32, %arg1: memref<8x2xi32, #tpu.memory_space<vmem>>, %arg2: memref<8x128xf32, #tpu.memory_space<vmem>>, %arg3: memref<64x256xbf16, #tpu.memory_space<vmem>>, %arg4: memref<64x256xbf16, #tpu.memory_space<vmem>>, %arg5: memref<8x128xf32, #tpu.memory_space<vmem>>, %arg6: memref<8x128xf32, #tpu.memory_space<vmem>>) attributes {dimension_semantics = [#tpu.dimension_semantics<parallel>], iteration_bounds = array<i64: 1>, scalar_prefetch = 0 : i64, scratch_operands = 0 : i64, tpu.core_type = #tpu.core_type<tc>, window_params = [{transform_indices = @transform_0, window_bounds = array<i64: 8, 2>}, {transform_indices = @transform_1, window_bounds = array<i64: 8, 128>}, {pipeline_mode = #tpu.pipeline_mode<synchronous>, transform_indices = @transform_2, window_bounds = array<i64: 64, 256>}, {pipeline_mode = #tpu.pipeline_mode<synchronous>, transform_indices = @transform_3, window_bounds = array<i64: 64, 256>}, {transform_indices = @transform_4, window_bounds = array<i64: 8, 128>}, {transform_indices = @transform_5, window_bounds = array<i64: 8, 128>}]} {
    %c0 = arith.constant 0 : index
    %c0_0 = arith.constant 0 : index
    %0 = vector.load %arg1[%c0, %c0_0] : memref<8x2xi32, #tpu.memory_space<vmem>>, vector<8x2xi32>
    %1 = tpu.iota {dimensions = array<i32: 1>} : vector<8x64xi32>
    %2 = vector.extract_strided_slice %0 {offsets = [0, 0], sizes = [8, 1], strides = [1, 1]} : vector<8x2xi32> to vector<8x1xi32>
    %3 = vector.broadcast %2 : vector<8x1xi32> to vector<8x64xi32>
    %4 = arith.cmpi eq, %3, %1 : vector<8x64xi32>
    %5 = vector.extract_strided_slice %0 {offsets = [0, 1], sizes = [8, 1], strides = [1, 1]} : vector<8x2xi32> to vector<8x1xi32>
    %6 = vector.broadcast %5 : vector<8x1xi32> to vector<8x64xi32>
    %7 = arith.cmpi eq, %6, %1 : vector<8x64xi32>
    %8 = arith.ori %4, %7 : vector<8x64xi1>
    %cst = arith.constant 1.000000e+00 : f32
    %cst_1 = arith.constant 0.000000e+00 : f32
    %9 = vector.broadcast %cst : f32 to vector<8x64xf32>
    %10 = vector.broadcast %cst_1 : f32 to vector<8x64xf32>
    %11 = arith.select %8, %9, %10 : vector<8x64xi1>, vector<8x64xf32>
    %12 = arith.truncf %11 : vector<8x64xf32> to vector<8x64xbf16>
    %c0_2 = arith.constant 0 : index
    %c0_3 = arith.constant 0 : index
    %13 = vector.load %arg3[%c0_2, %c0_3] : memref<64x256xbf16, #tpu.memory_space<vmem>>, vector<64x256xbf16>
    %cst_4 = arith.constant dense<0.000000e+00> : vector<8x256xf32>
    %14 = tpu.matmul %12, %13, %cst_4 {dimension_numbers = #tpu.dot_dimension_numbers<[1], [0], [0], [1], [0, 0, 1, 1], [], []>} : vector<8x64xbf16>, vector<64x256xbf16>, vector<8x256xf32> -> vector<8x256xf32>
    %c0_5 = arith.constant 0 : index
    %c0_6 = arith.constant 0 : index
    %15 = vector.load %arg4[%c0_5, %c0_6] : memref<64x256xbf16, #tpu.memory_space<vmem>>, vector<64x256xbf16>
    %cst_7 = arith.constant dense<0.000000e+00> : vector<8x256xf32>
    %16 = tpu.matmul %12, %15, %cst_7 {dimension_numbers = #tpu.dot_dimension_numbers<[1], [0], [0], [1], [0, 0, 1, 1], [], []>} : vector<8x64xbf16>, vector<64x256xbf16>, vector<8x256xf32> -> vector<8x256xf32>
    %17 = arith.addf %14, %16 : vector<8x256xf32>
    %18 = vector.extract_strided_slice %17 {offsets = [0, 0], sizes = [8, 128], strides = [1, 1]} : vector<8x256xf32> to vector<8x128xf32>
    %19 = vector.extract_strided_slice %17 {offsets = [0, 128], sizes = [8, 128], strides = [1, 1]} : vector<8x256xf32> to vector<8x128xf32>
    %c0_8 = arith.constant 0 : index
    %c0_9 = arith.constant 0 : index
    %20 = vector.load %arg2[%c0_8, %c0_9] : memref<8x128xf32, #tpu.memory_space<vmem>>, vector<8x128xf32>
    %21 = math.cos %20 : vector<8x128xf32>
    %22 = math.sin %20 : vector<8x128xf32>
    %23 = arith.mulf %18, %21 : vector<8x128xf32>
    %24 = arith.mulf %19, %22 : vector<8x128xf32>
    %25 = arith.subf %23, %24 : vector<8x128xf32>
    %c0_10 = arith.constant 0 : index
    %c0_11 = arith.constant 0 : index
    %26 = vector.load %arg5[%c0_10, %c0_11] : memref<8x128xf32, #tpu.memory_space<vmem>>, vector<8x128xf32>
    tpu.vector_store %arg5[%c0_10, %c0_11], %25 {strides = array<i32>} : memref<8x128xf32, #tpu.memory_space<vmem>>, vector<8x128xf32>,
    %27 = arith.mulf %18, %22 : vector<8x128xf32>
    %28 = arith.mulf %19, %21 : vector<8x128xf32>
    %29 = arith.addf %27, %28 : vector<8x128xf32>
    %c0_12 = arith.constant 0 : index
    %c0_13 = arith.constant 0 : index
    %30 = vector.load %arg6[%c0_12, %c0_13] : memref<8x128xf32, #tpu.memory_space<vmem>>, vector<8x128xf32>
    tpu.vector_store %arg6[%c0_12, %c0_13], %29 {strides = array<i32>} : memref<8x128xf32, #tpu.memory_space<vmem>>, vector<8x128xf32>,
    return
  }
  func.func @transform_0(%arg0: i32) -> (i32, i32) {
    %c0_i32 = arith.constant 0 : i32
    %c0_i32_0 = arith.constant 0 : i32
    return %arg0, %c0_i32 : i32, i32
  }
  func.func @transform_1(%arg0: i32) -> (i32, i32) {
    %c0_i32 = arith.constant 0 : i32
    %c0_i32_0 = arith.constant 0 : i32
    return %arg0, %c0_i32 : i32, i32
  }
  func.func @transform_2(%arg0: i32) -> (i32, i32) {
    %c0_i32 = arith.constant 0 : i32
    %c0_i32_0 = arith.constant 0 : i32
    %c0_i32_1 = arith.constant 0 : i32
    return %c0_i32, %c0_i32_0 : i32, i32
  }
  func.func @transform_3(%arg0: i32) -> (i32, i32) {
    %c0_i32 = arith.constant 0 : i32
    %c0_i32_0 = arith.constant 0 : i32
    %c0_i32_1 = arith.constant 0 : i32
    return %c0_i32, %c0_i32_0 : i32, i32
  }
  func.func @transform_4(%arg0: i32) -> (i32, i32) {
    %c0_i32 = arith.constant 0 : i32
    %c0_i32_0 = arith.constant 0 : i32
    return %arg0, %c0_i32 : i32, i32
  }
  func.func @transform_5(%arg0: i32) -> (i32, i32) {
    %c0_i32 = arith.constant 0 : i32
    %c0_i32_0 = arith.constant 0 : i32
    return %arg0, %c0_i32 : i32, i32
  }
}

</mosaic_0001>

<bundles_post_ra>
// kernel: tpu_custom_call.1
= control target key start
LH: loop header
LB: loop body
LE: loop exit
PB: predicated region body
PF: predicated region fallthrough
CT: control target
= control target key end

     0   :  { %11 = vsyncpa [#allocation3], 0  ;;  %s797_s0 = inlined_call_operand.vmem [shape: s32[8,2], index: 0, kind: input, shape index: {}]   ;;  %s798_s1 = inlined_call_operand.vmem [shape: f32[8,128], index: 1, kind: input, shape index: {}]   ;;  %s799_s2 = inlined_call_operand.hbm [shape: bf16[64,256], index: 2, kind: input, shape index: {}]   ;;  %s800_s3 = inlined_call_operand.hbm [shape: bf16[64,256], index: 3, kind: input, shape index: {}]   ;;  %s801_s4 = inlined_call_operand.hbm [shape: f32[8,128], index: 4, kind: output, shape index: {0}]   ;;  %s802_s5 = inlined_call_operand.hbm [shape: f32[8,128], index: 5, kind: output, shape index: {1}]  }
   0x1   :  { %12 = vsyncpa [#allocation6], 0 }
   0x2   :  { %13 = vsyncpa [#allocation4], 0 }
   0x3   :  { %14 = vsyncpa [#allocation9], 0  ;;  %s665_s18 = smov [#allocation2]   ;;  %s569_s22 = scalar_lea.hbm %s799_s2, 1024 }
   0x4   :  { %s24_s19 = sshll.u32 %s665_s18, 4  ;;  %p570_p0 = scmp.ne.s32.totalorder %s799_s2, %s569_s22  ;;  %s25_s19 = int_to_ptr.vmem [resolvable:$true] %s24_s19 }
   0x5   :  { %p573_p1 = scmp.lt.u32.totalorder %s569_s22, %s799_s2 }
   0x7   :  { %p575_p2 = pnand %p573_p1, %p570_p0 }
   0x9   :  { %578 = shalt.err (!%p575_p2)
}
   0xa   :  { %s579_s27 = scalar_lea.vmem %s25_s19, 1024  ;;  %p584_p4 = scmp.lt.s32.totalorder %s25_s19, %s25_s19 }
   0xb   :  { %p580_p3 = scmp.ne.s32.totalorder %s25_s19, %s579_s27  ;;  %p585_p5 = scmp.lt.s32.totalorder %s579_s27, %s579_s27 }
   0xd   :  { %p586_p6 = por %p585_p5, %p584_p4 }
   0xf   :  { %p587_p7 = pnand %p586_p6, %p580_p3 }
  0x11   :  { %590 = shalt.err (!%p587_p7)
}
  0x12   :  { %s666_s28 = smov 128   ;;  %s667_s29 = smov 8  }
  0x13   :  { %30 = dma.hbm_to_vmem [thread:$0]  %s799_s2, 1024, %s25_s19, [#allocation3], %s666_s28, %s666_s28, %s667_s29  }
  0x14   :  { %s668_s7 = smov [#allocation5]   ;;  %s591_s11 = scalar_lea.hbm %s800_s3, 1024 }
  0x15   :  { %s36_s8 = sshll.u32 %s668_s7, 4  ;;  %p592_p8 = scmp.ne.s32.totalorder %s800_s3, %s591_s11  ;;  %s37_s8 = int_to_ptr.vmem [resolvable:$true] %s36_s8 }
  0x16   :  { %p595_p9 = scmp.lt.u32.totalorder %s591_s11, %s800_s3 }
  0x18   :  { %p597_p10 = pnand %p595_p9, %p592_p8 }
  0x1a   :  { %600 = shalt.err (!%p597_p10)
}
  0x1b   :  { %s601_s16 = scalar_lea.vmem %s37_s8, 1024  ;;  %p606_p12 = scmp.lt.s32.totalorder %s37_s8, %s37_s8 }
  0x1c   :  { %p602_p11 = scmp.ne.s32.totalorder %s37_s8, %s601_s16  ;;  %p607_p13 = scmp.lt.s32.totalorder %s601_s16, %s601_s16 }
  0x1e   :  { %p608_p0 = por %p607_p13, %p606_p12 }
  0x20   :  { %p609_p1 = pnand %p608_p0, %p602_p11 }
  0x22   :  { %612 = shalt.err (!%p609_p1)
}
  0x23   :  { %42 = dma.hbm_to_vmem [thread:$0]  %s800_s3, 1024, %s37_s8, [#allocation6], %s666_s28, %s666_s28, %s667_s29  }
  0x24   :  { %657 = dma.done.wait [#allocation3], 1024  }
  0x25   :  { %658 = vsyncadd [#allocation3], 4294966272 }
  0x26   :  { %659 = dma.done.wait [#allocation6], 1024  }
  0x27   :  { %660 = vsyncadd [#allocation6], 4294966272  ;;  %v669_v0 = vmov 0   ;;  %v50_v1 = vld [vmem:[%s797_s0] sm:$0xff]  ;;  %v541_v2 = vld [vmem:[#allocation5 + $0x4] ss:$8 sps:$4 sm:$0xff]   ;;  %v51_v19 = vlaneseq }
  0x28   :  { %539 = vset.pattern.permute.xlu0 %v669_v0  ;;  %156 = vmatprep.mubr.bf16.mxu1 %v669_v0  ;;  %v543_v3 = vld [vmem:[#allocation2 + $0x4] ss:$8 sps:$4 sm:$0xff]   ;;  %v545_v4 = vld [vmem:[#allocation5] ss:$8 sps:$4 sm:$0xff]   ;;  %v547_v6 = vld [vmem:[#allocation5 + $0x14] ss:$8 sps:$4 sm:$0xff]  }
  0x29   :  { %237 = vmatprep.mubr.bf16.mxu0 %v669_v0  ;;  %54 = vperm.xlu0 %539, %v50_v1   ;;  %v546_v5 = vld [vmem:[#allocation2] ss:$8 sps:$4 sm:$0xff]   ;;  %v549_v7 = vld [vmem:[#allocation2 + $0x14] ss:$8 sps:$4 sm:$0xff]   ;;  %v670_v8 = vmov 1   ;;  %v52_v21 = vand.u32 127, %v51_v19 }
  0x2a   :  { %124 = vmatprep.subr.bf16.mxu1 %v541_v2  ;;  %205 = vmatprep.subr.bf16.mxu0 %v543_v3  ;;  %v551_v9 = vld [vmem:[#allocation5 + $0x10] ss:$8 sps:$4 sm:$0xff]   ;;  %v553_v11 = vld [vmem:[#allocation5 + $0x24] ss:$8 sps:$4 sm:$0xff]   ;;  %v557_v13 = vld [vmem:[#allocation5 + $0x20] ss:$8 sps:$4 sm:$0xff]  }
  0x2b   :  { %125 = vmatpush1.bf16.msra.mxu1 %v545_v4  ;;  %206 = vmatpush1.bf16.msra.mxu0 %v546_v5  ;;  %v552_v10 = vld [vmem:[#allocation2 + $0x10] ss:$8 sps:$4 sm:$0xff]   ;;  %v555_v12 = vld [vmem:[#allocation2 + $0x24] ss:$8 sps:$4 sm:$0xff]   ;;  %v558_v14 = vld [vmem:[#allocation2 + $0x20] ss:$8 sps:$4 sm:$0xff]  }
  0x2c   :  { %126 = vmatprep.subr.bf16.mxu1 %v547_v6  ;;  %207 = vmatprep.subr.bf16.mxu0 %v549_v7  ;;  %v559_v15 = vld [vmem:[#allocation5 + $0x34] ss:$8 sps:$4 sm:$0xff]   ;;  %v563_v17 = vld [vmem:[#allocation5 + $0x30] ss:$8 sps:$4 sm:$0xff]   ;;  %v671_v23 = vmov 0.0   ;;  %vm120_vm3 = vcmask 523264  }
  0x2d   :  { %540 = vset.pattern.permute.xlu0 %v670_v8  ;;  %v561_v16 = vld [vmem:[#allocation2 + $0x34] ss:$8 sps:$4 sm:$0xff]   ;;  %v564_v18 = vld [vmem:[#allocation2 + $0x30] ss:$8 sps:$4 sm:$0xff]   ;;  %v672_v34 = vmov 2102212464  }
  0x2e   :  { %58 = vperm.xlu0 %540, %v50_v1   ;;  %v740_v26 = vld [vmem:[%s798_s1] sm:$0xff]  ;;  %v673_v36 = vmov 920167782   ;;  %v674_v41 = vmov 1326507024   ;;  %s678_s1 = smov [#allocation7]  }
  0x2f   :  { %127 = vmatpush1.bf16.msra.mxu1 %v551_v9  ;;  %208 = vmatpush1.bf16.msra.mxu0 %v552_v10  ;;  %v250_v27 = vand.u32 2139095040, %v740_v26  ;;  %v247_v38 = vand.u32 2147483647, %v740_v26  ;;  %v675_v43 = vmov 683565275   ;;  %vm249_vm11 = vcmp.lt.s32.totalorder %v740_v26, 0 }
  0x30   :  { %128 = vmatprep.subr.bf16.mxu1 %v553_v11  ;;  %209 = vmatprep.subr.bf16.mxu0 %v555_v12  ;;  %v676_v45 = vmov 2475754826   ;;  %v677_v48 = vmov 2131351028   ;;  %s468_s20 = sshll.u32 %s678_s1, 4  ;;  %s679_s21 = smov [#allocation8]   ;;  %s469_s20 = int_to_ptr.vmem [resolvable:$true] %s468_s20 }
  0x31   :  { %v251_v28 = vshrl.u32 %v250_v27, 23  ;;  %v254_v53 = vand.u32 8388607, %v247_v38  ;;  %vm248_vm12 = vcmp.le.f32.partialorder %v247_v38, 0.7853982  ;;  %s478_s22 = sshll.u32 %s679_s21, 4  ;;  %p618_p3 = scmp.lt.s32.totalorder %s469_s20, %s469_s20  ;;  %s479_s22 = int_to_ptr.vmem [resolvable:$true] %s478_s22 }
  0x32   :  { %s613_s23 = scalar_lea.vmem %s469_s20, 128 }
  0x33   :  { %129 = vmatpush1.bf16.msra.mxu1 %v557_v13  ;;  %210 = vmatpush1.bf16.msra.mxu0 %v558_v14  ;;  %v510_v29 = vadd.s32 4294967169, %v251_v28  ;;  %v255_v59 = vor.u32 8388608, %v254_v53  ;;  %p614_p2 = scmp.ne.s32.totalorder %s469_s20, %s613_s23  ;;  %p619_p4 = scmp.lt.s32.totalorder %s613_s23, %s613_s23 }
  0x34   :  { %130 = vmatprep.subr.bf16.mxu1 %v559_v15  ;;  %211 = vmatprep.subr.bf16.mxu0 %v561_v16 }
  0x35   :  { %v257_v30 = vadd.s32 1, %v510_v29  ;;  %v295_v1 = vshll.u32 %v255_v59, 8  ;;  %p620_p5 = por %p619_p4, %p618_p3 }
  0x37   :  { %131 = vmatpush1.bf16.msra.mxu1 %v563_v17  ;;  %212 = vmatpush1.bf16.msra.mxu0 %v564_v18  ;;  %vm258_vm4 = vcmp.gt.s32.totalorder %v257_v30, 0  ;;  %p621_p6 = pnand %p620_p5, %p614_p2 }
  0x38   :  { %v259_v31 = vsel %vm258_vm4, %v257_v30, 0 }
  0x39   :  { %v261_v32 = vand.u32 31, %v259_v31  ;;  %v260_v39 = vshrl.u32 %v259_v31, 5 }
  0x3b   :  { %v262_v33 = vsub.s32 32, %v261_v32  ;;  %v273_v35 = vshll.u32 %v672_v34, %v261_v32  ;;  %v276_v40 = vshll.u32 %v673_v36, %v261_v32  ;;  %v264_v44 = vshll.u32 %v675_v43, %v261_v32 }
  0x3c   :  { %v267_v47 = vshll.u32 %v676_v45, %v261_v32  ;;  %v270_v50 = vshll.u32 %v677_v48, %v261_v32  ;;  %vm282_vm5 = vcmp.lt.s32.totalorder %v260_v39, 4  ;;  %vm279_vm6 = vcmp.lt.s32.totalorder %v260_v39, 1 }
  0x3d   :  { %v274_v37 = vshrl.u32 %v673_v36, %v262_v33  ;;  %v277_v42 = vshrl.u32 %v674_v41, %v262_v33  ;;  %v265_v46 = vshrl.u32 %v676_v45, %v262_v33  ;;  %v268_v49 = vshrl.u32 %v677_v48, %v262_v33 }
  0x3e   :  { %v271_v51 = vshrl.u32 %v672_v34, %v262_v33  ;;  %vm281_vm7 = vcmp.lt.s32.totalorder %v260_v39, 3  ;;  %vm280_vm8 = vcmp.lt.s32.totalorder %v260_v39, 2  ;;  %v263_v6 = vshrl.u32 %v675_v43, %v262_v33 }
  0x3f   :  { %v275_v52 = vor.u32 %v274_v37, %v273_v35  ;;  %v278_v54 = vor.u32 %v277_v42, %v276_v40  ;;  %v266_v55 = vor.u32 %v265_v46, %v264_v44  ;;  %v269_v56 = vor.u32 %v268_v49, %v267_v47 }
  0x40   :  { %v272_v57 = vor.u32 %v271_v51, %v270_v50 }
  0x41   :  { %v288_v58 = vsel %vm282_vm5, %v275_v52, 920167782  ;;  %v292_v60 = vsel %vm282_vm5, %v278_v54, 1326507024  ;;  %v287_v61 = vsel %vm279_vm6, %v266_v55, %v269_v56  ;;  %v283_v10 = vsel %vm279_vm6, %v263_v6, %v266_v55 }
  0x42   :  { %v289_v62 = vsel %vm281_vm7, %v272_v57, %v288_v58  ;;  %v291_v63 = vsel %vm279_vm6, %v269_v56, %v272_v57  ;;  %v293_v0 = vsel %vm281_vm7, %v275_v52, %v292_v60  ;;  %v284_v9 = vsel %vm282_vm5, %v272_v57, 2102212464 }
  0x43   :  { %v290_v2 = vsel %vm280_vm8, %v287_v61, %v289_v62  ;;  %v294_v3 = vsel %vm280_vm8, %v291_v63, %v293_v0  ;;  %v285_v11 = vsel %vm281_vm7, %v269_v56, %v284_v9 }
  0x44   :  { %v754_v4 = vmul.u32.u64.low %v295_v1, %v290_v2  ;;  %v755_v5 = vmul.u32.u64.high %v295_v1, %v290_v2, %v754_v4  ;;  %v757_v7 = vmul.u32.u64.low %v295_v1, %v294_v3  ;;  %v758_v8 = vmul.u32.u64.high %v295_v1, %v294_v3, %v757_v7 }
  0x45   :  { %v286_v12 = vsel %vm280_vm8, %v283_v10, %v285_v11 }
  0x46   :  { %v305_v13 = vadd.s32 1, %v755_v5  ;;  %vm304_vm9 = vc.u32 %v758_v8, %v754_v4  ;;  %v302_v14 = vmul.u32 %v295_v1, %v286_v12  ;;  %v303_v28 = vadd.s32 %v754_v4, %v758_v8 }
  0x48   :  { %v306_v15 = vsel %vm304_vm9, %v305_v13, %v755_v5 }
  0x49   :  { %v307_v16 = vadd.s32 %v306_v15, %v302_v14 }
  0x4b   :  { %v308_v17 = vadd.s32 536870912, %v307_v16 }
  0x4d   :  { %v309_v18 = vshrl.u32 %v308_v17, 30 }
  0x4f   :  { %v310_v19 = vshll.u32 %v309_v18, 30  ;;  %v333_v42 = vsub.s32 4, %v309_v18 }
  0x51   :  { %v334_v44 = vsel %vm249_vm11, %v333_v42, %v309_v18 }
  0x52   :  { %v336_v45 = vsel %vm248_vm12, 0, %v334_v44 }
  0x53   :  { %v443_v46 = vadd.s32 3, %v336_v45  ;;  %v340_v49 = vand.u32 3, %v336_v45 }
  0x55   :  { %v444_v50 = vand.u32 3, %v443_v46  ;;  %vm342_vm13 = vcmp.eq.s32.totalorder %v340_v49, 0  ;;  %vm345_vm14 = vcmp.eq.s32.totalorder %v340_v49, 2 }
  0x57   :  { %vm446_vm15 = vcmp.eq.s32.totalorder %v444_v50, 0 }
  0xa8   :  { %v55_v20 = vpop.permute.xlu0 %54 }
  0xa9   :  { %vm56_vm0 = vcmp.eq.s32.totalorder %v55_v20, %v52_v21  ;;  %v311_v20 = vsub.s32 %v307_v16, %v310_v19 }
  0xad   :  { %v59_v22 = vpop.permute.xlu0 %58 }
  0xae   :  { %vm60_vm1 = vcmp.eq.s32.totalorder %v59_v22, %v52_v21  ;;  %v313_v21 = vsub.s32 0, %v311_v20 }
  0xaf   :  { %vm61_vm2 = vmor %vm56_vm0, %vm60_vm1  ;;  %vm449_vm0 = vcmp.eq.s32.totalorder %v444_v50, 2  ;;  %vm341_vm1 = vcmp.lt.s32.totalorder %v340_v49, 2 }
  0xb0   :  { %v62_v24 = vsel %vm61_vm2, 1.0, %v671_v23  ;;  %v511_v22 = vmin.u32 %v313_v21, %v311_v20  ;;  %vm445_vm2 = vcmp.lt.s32.totalorder %v444_v50, 2 }
  0xb1   :  { %v63_v25 = vpack.c.bf16 %v62_v24, %v62_v24 }
  0xb2   :  { %v315_v23 = vclz %v511_v22 }
  0xb3   :  { %500 = vmatmul.mubr.msk.bf16.vlgmr.msra.gmra.mrb[0].mxu1 %vm120_vm3, %v63_v25  ;;  %509 = vmatmul.mubr.msk.bf16.vlgmr.msra.gmra.mrb[0].mxu0 %vm120_vm3, %v63_v25  ;;  %vm339_vm3 = vweird.f32 %v740_v26 }
  0xb4   :  { %v512_v24 = vadd.s32 4294967294, %v315_v23 }
  0xb6   :  { %vm513_vm10 = vcmp.lt.s32.totalorder %v512_v24, 0 }
  0xb7   :  { %v318_v25 = vsel %vm513_vm10, 0, %v512_v24 }
  0xb8   :  { %v323_v27 = vsub.s32 4294967266, %v318_v25  ;;  %v319_v29 = vsub.s32 32, %v318_v25  ;;  %v320_v31 = vshll.u32 %v311_v20, %v318_v25 }
  0xba   :  { %v324_v30 = vadd.s32 127, %v323_v27  ;;  %v321_v32 = vshrl.u32 %v303_v28, %v319_v29 }
  0xbc   :  { %v325_v33 = vshll.u32 %v324_v30, 23  ;;  %v322_v34 = vor.u32 %v321_v32, %v320_v31 }
  0xbe   :  { %v326_v35 = vor.u32 4788187, %v325_v33  ;;  %v329_v37 = vcvt.s32.f32 %v322_v34 }
  0xc0   :  { %v327_v36 = vand.u32 2147483647, %v326_v35 }
  0xc2   :  { %v330_v39 = vmul.f32 %v329_v37, %v327_v36 }
  0xc4   :  { %v331_v40 = vxor.u32 2147483648, %v330_v39 }
  0xc6   :  { %v332_v41 = vsel %vm249_vm11, %v331_v40, %v330_v39 }
  0xc7   :  { %v335_v43 = vsel %vm248_vm12, %v740_v26, %v332_v41 }
  0xc8   :  { %565 = vcosq.f32 %v335_v43 }
  0xc9   :  { %567 = vsinq.f32 %v335_v43 }
  0xd2   :  { %v566_v47 = vpop.eup %565 }
  0xd3   :  { %v568_v48 = vpop.eup %567  ;;  %v346_v52 = vxor.u32 2147483648, %v566_v47 }
  0xd4   :  { %v343_v51 = vxor.u32 2147483648, %v568_v48 }
  0xd5   :  { %v347_v53 = vsel %vm345_vm14, %v346_v52, %v568_v48  ;;  %v451_v55 = vsel %vm449_vm0, %v346_v52, %v568_v48 }
  0xd6   :  { %v344_v38 = vsel %vm342_vm13, %v566_v47, %v343_v51  ;;  %v448_v54 = vsel %vm446_vm15, %v566_v47, %v343_v51 }
  0xd7   :  { %v348_v56 = vsel %vm341_vm1, %v344_v38, %v347_v53  ;;  %v452_v57 = vsel %vm445_vm2, %v448_v54, %v451_v55 }
  0xd8   :  { %v349_v60 = vsel %vm339_vm3, nan, %v348_v56  ;;  %v453_v61 = vsel %vm339_vm3, nan, %v452_v57 }
 0x186   :  { %v158_v58 = vpop.f32.mrb[0].mxu1  ;;  %v239_v59 = vpop.f32.mrb[0].mxu0 }
 0x187   :  { %v240_v62 = vadd.f32 %v239_v59, %v158_v58  ;;  %v160_v63 = vpop.f32.mrb[1].mxu1  ;;  %v241_v0 = vpop.f32.mrb[1].mxu0 }
 0x188   :  { %v242_v1 = vadd.f32 %v241_v0, %v160_v63  ;;  %v162_v2 = vpop.f32.mrb[2].mxu1  ;;  %v243_v3 = vpop.f32.mrb[2].mxu0 }
 0x189   :  { %v454_v4 = vmul.f32 %v349_v60, %v240_v62  ;;  %v458_v5 = vmul.f32 %v453_v61, %v240_v62  ;;  %v163_v6 = vpop.f32.mrb[3].mxu1  ;;  %v244_v7 = vpop.f32.mrb[3].mxu0 }
 0x18a   :  { %v455_v8 = vmul.f32 %v453_v61, %v242_v1  ;;  %v459_v26 = vmul.f32 %v349_v60, %v242_v1 }
 0x18c   :  { %v456_v9 = vsub.f32 %v454_v4, %v455_v8  ;;  %v460_v10 = vadd.f32 %v459_v26, %v458_v5 }
 0x18e   :  { %457 = vst [vmem:[#allocation7] sm:$0xff] %v456_v9  ;;  %461 = vst [vmem:[#allocation8] sm:$0xff] %v460_v10 }
 0x18f   :  { %624 = shalt.err (!%p621_p6)
}
 0x190   :  { %s625_s26 = scalar_lea.hbm %s801_s4, 128 }
 0x191   :  { %p626_p7 = scmp.ne.s32.totalorder %s801_s4, %s625_s26  ;;  %p629_p8 = scmp.lt.u32.totalorder %s625_s26, %s801_s4 }
 0x193   :  { %p631_p9 = pnand %p629_p8, %p626_p7 }
 0x195   :  { %634 = shalt.err (!%p631_p9)
}
 0x196   :  { %471 = dma.vmem_to_hbm [thread:$0]  %s469_s20, 128, %s801_s4, [#allocation4]  }
 0x197   :  { %s635_s8 = scalar_lea.vmem %s479_s22, 128  ;;  %p640_p11 = scmp.lt.s32.totalorder %s479_s22, %s479_s22 }
 0x198   :  { %p636_p10 = scmp.ne.s32.totalorder %s479_s22, %s635_s8  ;;  %p641_p12 = scmp.lt.s32.totalorder %s635_s8, %s635_s8 }
 0x19a   :  { %p642_p13 = por %p641_p12, %p640_p11 }
 0x19c   :  { %p643_p0 = pnand %p642_p13, %p636_p10 }
 0x19e   :  { %646 = shalt.err (!%p643_p0)
}
 0x19f   :  { %s647_s11 = scalar_lea.hbm %s802_s5, 128 }
 0x1a0   :  { %p648_p1 = scmp.ne.s32.totalorder %s802_s5, %s647_s11  ;;  %p651_p2 = scmp.lt.u32.totalorder %s647_s11, %s802_s5 }
 0x1a2   :  { %p653_p3 = pnand %p651_p2, %p648_p1 }
 0x1a4   :  { %656 = shalt.err (!%p653_p3)
}
 0x1a5   :  { %481 = dma.vmem_to_hbm [thread:$0]  %s479_s22, 128, %s802_s5, [#allocation9]  }
 0x1a6   :  { %661 = dma.done.wait [#allocation4], 128  }
 0x1a7   :  { %662 = vsyncadd [#allocation4], 4294967168 }
 0x1a8   :  { %663 = dma.done.wait [#allocation9], 128  }
 0x1a9   :  { %664 = vsyncadd [#allocation9], 4294967168 }
 0x1aa   :  { %488 = vsyncpa [#allocation3], 1 }
 0x1ab   :  { %489 = vsyncpa [#allocation6], 1 }
 0x1ac   :  { %490 = vsyncpa [#allocation4], 1 }
 0x1ad   :  { %491 = vsyncpa [#allocation9], 1 }

</bundles_post_ra>
